<compile_context>
chip_gen: v7x
topology: tpu7x:2x2x1
jax: 0.10.0
libtpu: 0.0.40
codegen_flags: <defaults>
</compile_context>

<pallas_src>
import jax
import jax.numpy as jnp
import numpy as np
from jax.experimental import pallas as pl
from jax.experimental.pallas import tpu as pltpu


# ----------------------------------------------------------------------------
# Fused multi-layer MLP kernel: relu(x @ W0 + b0) -> relu(. @ W1 + b1) -> ...
# ----------------------------------------------------------------------------
def _make_fused_mlp_kernel(num_layers, use_activation):
    def kernel(*refs):
        # refs = (x_ref, w0_ref, b0_ref, w1_ref, b1_ref, ..., out_ref)
        x_ref = refs[0]
        out_ref = refs[-1]
        h = x_ref[...]  # (N, input_len), f32, VMEM-resident
        for li in range(num_layers):
            w_ref = refs[1 + 2 * li]
            b_ref = refs[2 + 2 * li]
            h = jnp.dot(h, w_ref[...], preferred_element_type=jnp.float32) + b_ref[...]
            if use_activation:
                h = jnp.maximum(h, 0.0)  # activate_func = F.relu
        out_ref[...] = h.astype(out_ref.dtype)

    return kernel


def multilayer_dnn_fused(x_2d, layers, *, use_activation):
    """x_2d: (N, input_len). layers: list of (W, b) with W: (Din, Dout), b: (1, Dout)."""
    N, _ = x_2d.shape
    out_dim = layers[-1][0].shape[1]
    num_layers = len(layers)

    in_specs = [pl.BlockSpec(x_2d.shape, lambda i: (0, 0))]
    operands = [x_2d]
    for w, b in layers:
        in_specs.append(pl.BlockSpec(w.shape, lambda i: (0, 0)))
        in_specs.append(pl.BlockSpec(b.shape, lambda i: (0, 0)))
        operands.extend([w, b])

    kernel = _make_fused_mlp_kernel(num_layers, use_activation)
    return pl.pallas_call(
        kernel,
        out_shape=jax.ShapeDtypeStruct((N, out_dim), jnp.float32),
        grid=(1,),  # single step: whole problem resident in VMEM
        in_specs=in_specs,
        out_specs=pl.BlockSpec((N, out_dim), lambda i: (0, 0)),
    )(*operands)


# ----------------------------------------------------------------------------
# Full MultiLayerDNN forward (batch_first layout; Linear acts on last dim).
# ----------------------------------------------------------------------------
def multilayer_dnn_forward(x, params, *, use_activation=True):
    """x: (..., input_len) -> (..., hidden_units[-1])."""
    lead_shape = x.shape[:-1]
    in_dim = x.shape[-1]
    x_2d = x.reshape(-1, in_dim).astype(jnp.float32)
    out_2d = multilayer_dnn_fused(x_2d, params["layers"], use_activation=use_activation)
    return out_2d.reshape(*lead_shape, out_2d.shape[-1])


# ----------------------------------------------------------------------------
# Pure-JAX reference (same math) for correctness check.
# ----------------------------------------------------------------------------
def _ref_forward(x, params, use_activation=True):
    h = x.astype(jnp.float32)
    for w, b in params["layers"]:
        h = h @ w + b
        if use_activation:
            h = jnp.maximum(h, 0.0)
    return h


# ----------------------------------------------------------------------------
# Deterministic parameter construction (mirrors nn.Linear shapes/init bounds).
# ----------------------------------------------------------------------------
def init_params(key, input_len, hidden_units):
    layers = []
    in_dim = input_len
    for out_dim in hidden_units:
        scale = 1.0 / np.sqrt(in_dim)
        key, k1, k2 = jax.random.split(key, 3)
        # Stored pre-transposed: (in_features, out_features) so kernel does x @ W.
        w = jax.random.uniform(k1, (in_dim, out_dim), jnp.float32, -scale, scale)
        b = jax.random.uniform(k2, (1, out_dim), jnp.float32, -scale, scale)
        layers.append((w, b))
        in_dim = out_dim
    return {"layers": layers}


if __name__ == "__main__":
    INPUT_LEN = 4
    HIDDEN_UNITS = [32, 32]   # encoder -> hidden_units[0]; dnns[0] -> hidden_units[1]
    B, T = 2, 8

    key = jax.random.PRNGKey(0)
    key, kx = jax.random.split(key)
    x = jax.random.normal(kx, (B, T, INPUT_LEN), jnp.float32)

    params = init_params(key, INPUT_LEN, HIDDEN_UNITS)

    out = multilayer_dnn_forward(x, params, use_activation=True)  # activate_func = relu
    out = jax.block_until_ready(out)

    ref_out = _ref_forward(x, params, use_activation=True)
    np.testing.assert_allclose(np.asarray(out), np.asarray(ref_out),
                               rtol=1e-5, atol=1e-5)
    assert out.shape == (B, T, HIDDEN_UNITS[-1])

    # Also sanity-check the activate_func=None branch of the module.
    out_none = jax.block_until_ready(
        multilayer_dnn_forward(x, params, use_activation=False))
    ref_none = _ref_forward(x, params, use_activation=False)
    np.testing.assert_allclose(np.asarray(out_none), np.asarray(ref_none),
                               rtol=1e-5, atol=1e-5)

    print("KERNEL_OK")
</pallas_src>

<mosaic_0001>
module attributes {stable_mosaic.version = 11 : i64} {
  func.func @kernel(%arg0: i32, %arg1: memref<16x4xf32, #tpu.memory_space<vmem>>, %arg2: memref<4x32xf32, #tpu.memory_space<vmem>>, %arg3: memref<1x32xf32, #tpu.memory_space<vmem>>, %arg4: memref<32x32xf32, #tpu.memory_space<vmem>>, %arg5: memref<1x32xf32, #tpu.memory_space<vmem>>, %arg6: memref<16x32xf32, #tpu.memory_space<vmem>>) attributes {dimension_semantics = [#tpu.dimension_semantics<arbitrary>], iteration_bounds = array<i64: 1>, scalar_prefetch = 0 : i64, scratch_operands = 0 : i64, tpu.core_type = #tpu.core_type<tc>, window_params = [{pipeline_mode = #tpu.pipeline_mode<synchronous>, transform_indices = @transform_0, window_bounds = array<i64: 16, 4>}, {pipeline_mode = #tpu.pipeline_mode<synchronous>, transform_indices = @transform_1, window_bounds = array<i64: 4, 32>}, {pipeline_mode = #tpu.pipeline_mode<synchronous>, transform_indices = @transform_2, window_bounds = array<i64: 1, 32>}, {pipeline_mode = #tpu.pipeline_mode<synchronous>, transform_indices = @transform_3, window_bounds = array<i64: 32, 32>}, {pipeline_mode = #tpu.pipeline_mode<synchronous>, transform_indices = @transform_4, window_bounds = array<i64: 1, 32>}, {pipeline_mode = #tpu.pipeline_mode<synchronous>, transform_indices = @transform_5, window_bounds = array<i64: 16, 32>}]} {
    %c0 = arith.constant 0 : index
    %c0_0 = arith.constant 0 : index
    %0 = vector.load %arg1[%c0, %c0_0] : memref<16x4xf32, #tpu.memory_space<vmem>>, vector<16x4xf32>
    %c0_1 = arith.constant 0 : index
    %c0_2 = arith.constant 0 : index
    %1 = vector.load %arg2[%c0_1, %c0_2] : memref<4x32xf32, #tpu.memory_space<vmem>>, vector<4x32xf32>
    %cst = arith.constant dense<0.000000e+00> : vector<16x32xf32>
    %2 = tpu.matmul %0, %1, %cst {dimension_numbers = #tpu.dot_dimension_numbers<[1], [0], [0], [1], [0, 0, 1, 1], [], []>} : vector<16x4xf32>, vector<4x32xf32>, vector<16x32xf32> -> vector<16x32xf32>
    %c0_3 = arith.constant 0 : index
    %c0_4 = arith.constant 0 : index
    %3 = vector.load %arg3[%c0_3, %c0_4] : memref<1x32xf32, #tpu.memory_space<vmem>>, vector<1x32xf32>
    %4 = vector.broadcast %3 : vector<1x32xf32> to vector<16x32xf32>
    %5 = arith.addf %2, %4 : vector<16x32xf32>
    %cst_5 = arith.constant 0.000000e+00 : f32
    %6 = vector.broadcast %cst_5 : f32 to vector<16x32xf32>
    %7 = arith.maximumf %5, %6 : vector<16x32xf32>
    %c0_6 = arith.constant 0 : index
    %c0_7 = arith.constant 0 : index
    %8 = vector.load %arg4[%c0_6, %c0_7] : memref<32x32xf32, #tpu.memory_space<vmem>>, vector<32x32xf32>
    %cst_8 = arith.constant dense<0.000000e+00> : vector<16x32xf32>
    %9 = tpu.matmul %7, %8, %cst_8 {dimension_numbers = #tpu.dot_dimension_numbers<[1], [0], [0], [1], [0, 0, 1, 1], [], []>} : vector<16x32xf32>, vector<32x32xf32>, vector<16x32xf32> -> vector<16x32xf32>
    %c0_9 = arith.constant 0 : index
    %c0_10 = arith.constant 0 : index
    %10 = vector.load %arg5[%c0_9, %c0_10] : memref<1x32xf32, #tpu.memory_space<vmem>>, vector<1x32xf32>
    %11 = vector.broadcast %10 : vector<1x32xf32> to vector<16x32xf32>
    %12 = arith.addf %9, %11 : vector<16x32xf32>
    %cst_11 = arith.constant 0.000000e+00 : f32
    %13 = vector.broadcast %cst_11 : f32 to vector<16x32xf32>
    %14 = arith.maximumf %12, %13 : vector<16x32xf32>
    %c0_12 = arith.constant 0 : index
    %c0_13 = arith.constant 0 : index
    %15 = vector.load %arg6[%c0_12, %c0_13] : memref<16x32xf32, #tpu.memory_space<vmem>>, vector<16x32xf32>
    tpu.vector_store %arg6[%c0_12, %c0_13], %14 {strides = array<i32>} : memref<16x32xf32, #tpu.memory_space<vmem>>, vector<16x32xf32>,
    return
  }
  func.func @transform_0(%arg0: i32) -> (i32, i32) {
    %c0_i32 = arith.constant 0 : i32
    %c0_i32_0 = arith.constant 0 : i32
    %c0_i32_1 = arith.constant 0 : i32
    return %c0_i32, %c0_i32_0 : i32, i32
  }
  func.func @transform_1(%arg0: i32) -> (i32, i32) {
    %c0_i32 = arith.constant 0 : i32
    %c0_i32_0 = arith.constant 0 : i32
    %c0_i32_1 = arith.constant 0 : i32
    return %c0_i32, %c0_i32_0 : i32, i32
  }
  func.func @transform_2(%arg0: i32) -> (i32, i32) {
    %c0_i32 = arith.constant 0 : i32
    %c0_i32_0 = arith.constant 0 : i32
    %c0_i32_1 = arith.constant 0 : i32
    return %c0_i32, %c0_i32_0 : i32, i32
  }
  func.func @transform_3(%arg0: i32) -> (i32, i32) {
    %c0_i32 = arith.constant 0 : i32
    %c0_i32_0 = arith.constant 0 : i32
    %c0_i32_1 = arith.constant 0 : i32
    return %c0_i32, %c0_i32_0 : i32, i32
  }
  func.func @transform_4(%arg0: i32) -> (i32, i32) {
    %c0_i32 = arith.constant 0 : i32
    %c0_i32_0 = arith.constant 0 : i32
    %c0_i32_1 = arith.constant 0 : i32
    return %c0_i32, %c0_i32_0 : i32, i32
  }
  func.func @transform_5(%arg0: i32) -> (i32, i32) {
    %c0_i32 = arith.constant 0 : i32
    %c0_i32_0 = arith.constant 0 : i32
    %c0_i32_1 = arith.constant 0 : i32
    return %c0_i32, %c0_i32_0 : i32, i32
  }
}

</mosaic_0001>

<bundles_post_ra>
// kernel: tpu_custom_call.1
= control target key start
LH: loop header
LB: loop body
LE: loop exit
PB: predicated region body
PF: predicated region fallthrough
CT: control target
= control target key end

     0   :  { %10 = vsyncpa [#allocation3], 0  ;;  %s422_s0 = inlined_call_operand.vmem [shape: f32[16,4], index: 0, kind: input, shape index: {}]   ;;  %s423_s1 = inlined_call_operand.vmem [shape: f32[4,32], index: 1, kind: input, shape index: {}]   ;;  %s424_s2 = inlined_call_operand.vmem [shape: f32[1,32], index: 2, kind: input, shape index: {}]   ;;  %s425_s3 = inlined_call_operand.hbm [shape: f32[32,32], index: 3, kind: input, shape index: {}]   ;;  %s426_s4 = inlined_call_operand.vmem [shape: f32[1,32], index: 4, kind: input, shape index: {}]   ;;  %s427_s5 = inlined_call_operand.hbm [shape: f32[16,32], index: 5, kind: output, shape index: {}]  }
   0x1   :  { %11 = vsyncpa [#allocation4], 0  ;;  %s339_s18 = smov [#allocation2]   ;;  %s291_s22 = scalar_lea.hbm %s425_s3, 512 }
   0x2   :  { %s23_s19 = sshll.u32 %s339_s18, 4  ;;  %p292_p0 = scmp.ne.s32.totalorder %s425_s3, %s291_s22  ;;  %s24_s19 = int_to_ptr.vmem [resolvable:$true] %s23_s19 }
   0x3   :  { %p295_p1 = scmp.lt.u32.totalorder %s291_s22, %s425_s3 }
   0x5   :  { %p297_p2 = pnand %p295_p1, %p292_p0 }
   0x7   :  { %300 = shalt.err (!%p297_p2)
}
   0x8   :  { %s301_s27 = scalar_lea.vmem %s24_s19, 512  ;;  %p306_p4 = scmp.lt.s32.totalorder %s24_s19, %s24_s19 }
   0x9   :  { %p302_p3 = scmp.ne.s32.totalorder %s24_s19, %s301_s27  ;;  %p307_p5 = scmp.lt.s32.totalorder %s301_s27, %s301_s27 }
   0xb   :  { %p308_p6 = por %p307_p5, %p306_p4 }
   0xd   :  { %p309_p7 = pnand %p308_p6, %p302_p3 }
   0xf   :  { %312 = shalt.err (!%p309_p7)
}
  0x10   :  { %s340_s28 = smov 128   ;;  %s341_s29 = smov 8  }
  0x11   :  { %29 = dma.hbm_to_vmem [thread:$0]  %s425_s3, 512, %s24_s19, [#allocation3], %s340_s28, %s340_s28, %s341_s29  }
  0x12   :  { %335 = dma.done.wait [#allocation3], 512  }
  0x13   :  { %336 = vsyncadd [#allocation3], 4294966784  ;;  %vm52_vm0 = vcmask 1043456   ;;  %vm45_vm1 = vcmask 31744   ;;  %v37_v0 = vld [vmem:[%s423_s1] sm:$0xf] }
  0x14   :  { %v35_v1 = vld [vmem:[%s422_s0] sm:$0xff]  ;;  %v36_v2 = vld [vmem:[%s422_s0 + $0x8] sm:$0xff]  ;;  %263 = vmatprep.subr.msk.mxu0 %vm52_vm0, %v37_v0  ;;  %v135_v6 = vld [vmem:[#allocation2 + $0x10] sm:$0xff]  ;;  %vm144_vm2 = vcmask 261120   ;;  %s342_s14 = smov [#allocation5]  }
  0x15   :  { %265 = vmatprep.mubr.msk.f32.mxu0 %vm45_vm1, %v35_v1  ;;  %v133_v3 = vld [vmem:[#allocation2] sm:$0xff]  ;;  %v134_v4 = vld [vmem:[#allocation2 + $0x8] sm:$0xff]  ;;  %264 = vmatpush3.msk.msra.mxu0 %vm52_vm0, %v37_v0  ;;  %v136_v7 = vld [vmem:[#allocation2 + $0x18] sm:$0xff] }
  0x16   :  { %v279_v5 = vpack.c.bf16 %v134_v4, %v133_v3  ;;  %266 = vmatmul.mubr.msk.f32.vlgmr.msra.gmra.mrb[0].mxu0 %vm45_vm1, %v36_v2  ;;  %v283_v8 = vpack.c.bf16 %v136_v7, %v135_v6  ;;  %v247_v9 = vld [vmem:[%s424_s2] ss:$0 sm:$0xff]  ;;  %s235_s2 = sshll.u32 %s342_s14, 4  ;;  %s236_s2 = int_to_ptr.vmem [resolvable:$true] %s235_s2 }
  0x17   :  { %v251_v16 = vld [vmem:[%s426_s4] ss:$0 sm:$0xff]  ;;  %s313_s15 = scalar_lea.vmem %s236_s2, 256  ;;  %p318_p9 = scmp.lt.s32.totalorder %s236_s2, %s236_s2 }
  0x18   :  { %280 = vmatprep.subr.bf16.mxu1 %v279_v5  ;;  %p314_p8 = scmp.ne.s32.totalorder %s236_s2, %s313_s15  ;;  %p319_p10 = scmp.lt.s32.totalorder %s313_s15, %s313_s15 }
  0x19   :  { %282 = vmatpush3.bf16.msra.mxu1 %v279_v5 }
  0x1a   :  { %284 = vmatprep.subr.bf16.mxu1 %v283_v8  ;;  %p320_p11 = por %p319_p10, %p318_p9 }
  0x1c   :  { %p321_p12 = pnand %p320_p11, %p314_p8 }
  0x1d   :  { %286 = vmatpush3.bf16.msra.mxu1 %v283_v8 }
  0xe9   :  { %v267_v10 = vpop.f32.mrb[0].mxu0 }
  0xea   :  { %v128_v11 = vadd.f32 %v267_v10, %v247_v9  ;;  %v122_v12 = vpop.f32.mrb[1].mxu0 }
  0xeb   :  { %v123_v13 = vadd.f32 %v247_v9, %v122_v12 }
  0xec   :  { %v132_v15 = vmax.f32 %v128_v11, 0.0 }
  0xed   :  { %v131_v14 = vmax.f32 %v123_v13, 0.0 }
  0xef   :  { %276 = vmatprep.mubr.msk.f32.mxu1 %vm144_vm2, %v131_v14 }
  0xf0   :  { %277 = vmatmul.mubr.msk.f32.vlgmr.msra.gmra.mrb[0].mxu1 %vm144_vm2, %v132_v15 }
 0x1c3   :  { %v278_v17 = vpop.f32.mrb[0].mxu1 }
 0x1c4   :  { %v223_v18 = vadd.f32 %v278_v17, %v251_v16  ;;  %v217_v19 = vpop.f32.mrb[1].mxu1 }
 0x1c5   :  { %v218_v20 = vadd.f32 %v251_v16, %v217_v19 }
 0x1c6   :  { %v227_v21 = vmax.f32 %v223_v18, 0.0 }
 0x1c7   :  { %v226_v22 = vmax.f32 %v218_v20, 0.0 }
 0x1c8   :  { %229 = vst.msk [vmem:[#allocation5 + $0x8] sm:$0xff] %vm144_vm2, %v227_v21 }
 0x1c9   :  { %228 = vst.msk [vmem:[#allocation5] sm:$0xff] %vm144_vm2, %v226_v22 }
 0x1ca   :  { %324 = shalt.err (!%p321_p12)
}
 0x1cb   :  { %s325_s17 = scalar_lea.hbm %s427_s5, 256 }
 0x1cc   :  { %p326_p13 = scmp.ne.s32.totalorder %s427_s5, %s325_s17  ;;  %p329_p0 = scmp.lt.u32.totalorder %s325_s17, %s427_s5 }
 0x1ce   :  { %p331_p1 = pnand %p329_p0, %p326_p13 }
 0x1d0   :  { %334 = shalt.err (!%p331_p1)
}
 0x1d1   :  { %241 = dma.vmem_to_hbm [thread:$0]  %s236_s2, 256, %s427_s5, [#allocation4], %s340_s28, %s340_s28, %s341_s29  }
 0x1d2   :  { %337 = dma.done.wait [#allocation4], 256  }
 0x1d3   :  { %338 = vsyncadd [#allocation4], 4294967040 }
 0x1d4   :  { %245 = vsyncpa [#allocation3], 1 }
 0x1d5   :  { %246 = vsyncpa [#allocation4], 1 }

</bundles_post_ra>
